<compile_context>
chip_gen: v5e
topology: v5e:2x2
jax: 0.10.0
libtpu: 0.0.40
codegen_flags: <defaults>
</compile_context>

<pallas_src>
import jax
import jax.numpy as jnp
from jax.experimental import pallas as pl
from jax.experimental.pallas import tpu as pltpu

raw_text = (
    "We are about to study the idea of a computational process.\n"
    "Computational processes are abstract beings that inhabit computers.\n"
    "As they evolve, processes manipulate other abstract things called data.\n"
    "The evolution of a process is directed by a pattern of rules\n"
    "called a program. People create programs to direct processes. In effect,\n"
    "we conjure the spirits of the computer with our spells."
).split()

vocab = sorted(set(raw_text))
word_to_ix = {w: i for i, w in enumerate(vocab)}

VOCAB_SIZE = len(vocab)              # 49
EMBEDDING_DIM = 10                   # tutorial value
CONTEXT_SIZE = 2                     # tutorial value
HIDDEN = 128
CD = CONTEXT_SIZE * EMBEDDING_DIM    # 20
NEG_INF = -1e30                      # bias value for padded vocab lanes (finite on purpose)

B_TILE_MAX = 1024                    # large-batch tile cap (per review; VMEM is a non-issue)
SPLIT_THRESHOLD = 256                # below this, one tile (overhead-bound anyway)


def ngram_kernel(h_ref, w2_ref, b2_ref, out_ref):
    # h_ref  : VMEM (b_tile, HIDDEN)  pre-ReLU hidden activations (embedding@W1 + b1)
    # w2_ref : VMEM (HIDDEN, V_PAD)   zero-padded columns beyond the real vocab
    # b2_ref : VMEM (1, V_PAD)        padded lanes hold -1e30
    # out_ref: VMEM (b_tile, V_PAD)   lane-dense log-probs
    h = jnp.maximum(h_ref[...], 0.0)
    logits = jnp.dot(h, w2_ref[...], preferred_element_type=jnp.float32) + b2_ref[...]
    # Numerically stable log_softmax over the padded vocab axis: padded lanes hold
    # ~-1e30, so they never win the max and exp(-1e30 - m) == 0 in the sum. Padded
    # batch rows are all-zero -> logits == b2, still finite, no NaNs.
    m = jnp.max(logits, axis=-1, keepdims=True)
    lse = jnp.log(jnp.sum(jnp.exp(logits - m), axis=-1, keepdims=True)) + m
    out_ref[...] = logits - lse


def prepare_params(emb, w1, b1, w2, b2):
    """One-time parameter prep (hoisted out of the per-call forward).

    Returns:
      tables: (CONTEXT_SIZE, V, HIDDEN) f32, tables[c] = emb @ W1[c*D:(c+1)*D, :],
              with b1 folded into tables[0].
      w2p   : (HIDDEN, V_PAD) zero-padded second-layer weights.
      b2p   : (1, V_PAD) second-layer bias, padded lanes = -1e30.
    """
    V, D = emb.shape
    tables = jnp.stack(
        [emb @ w1[c * D:(c + 1) * D, :] for c in range(CONTEXT_SIZE)], axis=0)
    tables = tables.at[0].add(b1)                    # fold b1 once
    v_out = w2.shape[1]
    v_pad = 128 * pl.cdiv(v_out, 128)                # lane-dense, exactly 128 here
    w2p = jnp.pad(w2, ((0, 0), (0, v_pad - v_out)))
    b2p = jnp.pad(b2, ((0, 0), (0, v_pad - v_out)), constant_values=NEG_INF)
    return tables, w2p, b2p


def _pick_batch_tile(b):
    """Adaptive batch tile (static at trace time): multiple of 8 (f32 sublane)."""
    b_round = 8 * pl.cdiv(b, 8)
    if b_round <= SPLIT_THRESHOLD:
        tile = b_round                               # one tile; overhead dominates anyway
    elif b_round <= 2 * B_TILE_MAX:
        tile = 8 * pl.cdiv(pl.cdiv(b_round, 2), 8)   # exactly 2 tiles -> v7x megacore
    else:
        tile = B_TILE_MAX
    b_pad = tile * pl.cdiv(b_round, tile)
    return tile, b_pad


@jax.jit
def ngram_forward(idx, tables, w2p, b2p):
    """Batched forward: idx (B, CONTEXT_SIZE) int32 -> (B, VOCAB_SIZE) f32 log-probs.

    Row b equals the torch module's forward() for context b (B=1 reproduces the
    module's (1, V) output exactly).
    """
    B = idx.shape[0]
    H = tables.shape[-1]
    v_pad = w2p.shape[1]
    b_tile, b_pad = _pick_batch_tile(B)

    # Embedding lookup + linear1 as a gather+add over precomputed tables
    # (layout plumbing; replaces the lane-sparse K=20 matmul).
    h_pre = tables[0][idx[:, 0]]
    for c in range(1, CONTEXT_SIZE):
        h_pre = h_pre + tables[c][idx[:, c]]
    if b_pad != B:
        h_pre = jnp.pad(h_pre, ((0, b_pad - B), (0, 0)))

    out = pl.pallas_call(
        ngram_kernel,
        out_shape=jax.ShapeDtypeStruct((b_pad, v_pad), jnp.float32),
        grid=(b_pad // b_tile,),
        in_specs=[
            pl.BlockSpec((b_tile, H), lambda i: (i, 0)),      # activations: tiled over batch
            pl.BlockSpec((H, v_pad), lambda i: (0, 0)),       # weights VMEM-resident
            pl.BlockSpec((1, v_pad), lambda i: (0, 0)),
        ],
        out_specs=pl.BlockSpec((b_tile, v_pad), lambda i: (i, 0)),
        compiler_params=pltpu.CompilerParams(
            dimension_semantics=("parallel",),                # shard batch tiles across TCs
        ),
    )(h_pre, w2p, b2p)

    return out[:B, :VOCAB_SIZE]


def reference_forward(idx, emb, w1, b1, w2, b2):
    x = emb[idx].reshape(idx.shape[0], -1)
    h = jnp.maximum(x @ w1 + b1, 0.0)
    logits = h @ w2 + b2
    return jax.nn.log_softmax(logits, axis=-1)


if __name__ == "__main__":
    key = jax.random.PRNGKey(0)
    k_emb, k_w1, k_b1, k_w2, k_b2 = jax.random.split(key, 5)

    # Deterministic synthetic parameters (shapes match the module's __init__;
    # linear weights stored transposed vs torch, i.e. (in_features, out_features)).
    emb = jax.random.normal(k_emb, (VOCAB_SIZE, EMBEDDING_DIM), jnp.float32)
    w1 = jax.random.normal(k_w1, (CD, HIDDEN), jnp.float32) * 0.1
    b1 = jax.random.normal(k_b1, (1, HIDDEN), jnp.float32) * 0.1
    w2 = jax.random.normal(k_w2, (HIDDEN, VOCAB_SIZE), jnp.float32) * 0.1
    b2 = jax.random.normal(k_b2, (1, VOCAB_SIZE), jnp.float32) * 0.1

    # One-time param prep (hoisted out of the per-call forward).
    tables, w2p, b2p = prepare_params(emb, w1, b1, w2, b2)

    # All n-gram contexts from the corpus (as in the tutorial's training loop),
    # processed as one batch: row b is the module forward() for context b.
    contexts = [
        [word_to_ix[raw_text[i]], word_to_ix[raw_text[i + 1]]]
        for i in range(len(raw_text) - CONTEXT_SIZE)
    ]
    idx = jnp.asarray(contexts, dtype=jnp.int32)     # (B, 2), B ~ 60

    log_probs = ngram_forward(idx, tables, w2p, b2p)
    log_probs = jax.block_until_ready(log_probs)

    ref = reference_forward(idx, emb, w1, b1, w2, b2)
    assert log_probs.shape == (idx.shape[0], VOCAB_SIZE)
    assert jnp.allclose(log_probs, ref, atol=1e-5, rtol=1e-5), float(
        jnp.max(jnp.abs(log_probs - ref)))

    # Single-context case (the module's literal forward) still gives (1, V).
    one = ngram_forward(idx[:1], tables, w2p, b2p)
    one = jax.block_until_ready(one)
    assert one.shape == (1, VOCAB_SIZE)
    assert jnp.allclose(one, log_probs[:1], atol=1e-5, rtol=1e-5)

    print("KERNEL_OK")
</pallas_src>

<mosaic_0001>
module attributes {stable_mosaic.version = 11 : i64} {
  func.func @ngram_kernel(%arg0: i32, %arg1: memref<64x128xf32, #tpu.memory_space<vmem>>, %arg2: memref<128x128xf32, #tpu.memory_space<vmem>>, %arg3: memref<1x128xf32, #tpu.memory_space<vmem>>, %arg4: memref<64x128xf32, #tpu.memory_space<vmem>>) attributes {dimension_semantics = [#tpu.dimension_semantics<parallel>], iteration_bounds = array<i64: 1>, scalar_prefetch = 0 : i64, scratch_operands = 0 : i64, tpu.core_type = #tpu.core_type<tc>, window_params = [{transform_indices = @transform_0, window_bounds = array<i64: 64, 128>}, {pipeline_mode = #tpu.pipeline_mode<synchronous>, transform_indices = @transform_1, window_bounds = array<i64: 128, 128>}, {pipeline_mode = #tpu.pipeline_mode<synchronous>, transform_indices = @transform_2, window_bounds = array<i64: 1, 128>}, {transform_indices = @transform_3, window_bounds = array<i64: 64, 128>}]} {
    %c0 = arith.constant 0 : index
    %c0_0 = arith.constant 0 : index
    %0 = vector.load %arg1[%c0, %c0_0] : memref<64x128xf32, #tpu.memory_space<vmem>>, vector<64x128xf32>
    %cst = arith.constant 0.000000e+00 : f32
    %1 = vector.broadcast %cst : f32 to vector<64x128xf32>
    %2 = arith.maximumf %0, %1 : vector<64x128xf32>
    %c0_1 = arith.constant 0 : index
    %c0_2 = arith.constant 0 : index
    %3 = vector.load %arg2[%c0_1, %c0_2] : memref<128x128xf32, #tpu.memory_space<vmem>>, vector<128x128xf32>
    %cst_3 = arith.constant dense<0.000000e+00> : vector<64x128xf32>
    %4 = tpu.matmul %2, %3, %cst_3 {dimension_numbers = #tpu.dot_dimension_numbers<[1], [0], [0], [1], [0, 0, 1, 1], [], []>} : vector<64x128xf32>, vector<128x128xf32>, vector<64x128xf32> -> vector<64x128xf32>
    %c0_4 = arith.constant 0 : index
    %c0_5 = arith.constant 0 : index
    %5 = vector.load %arg3[%c0_4, %c0_5] : memref<1x128xf32, #tpu.memory_space<vmem>>, vector<1x128xf32>
    %6 = vector.broadcast %5 : vector<1x128xf32> to vector<64x128xf32>
    %7 = arith.addf %4, %6 : vector<64x128xf32>
    %cst_6 = arith.constant dense<0xFF800000> : vector<64xf32>
    %8 = vector.multi_reduction <maximumf>, %7, %cst_6 [1] : vector<64x128xf32> to vector<64xf32>
    %9 = vector.shape_cast %8 : vector<64xf32> to vector<64x1xf32>
    %10 = vector.broadcast %9 : vector<64x1xf32> to vector<64x128xf32>
    %11 = arith.subf %7, %10 : vector<64x128xf32>
    %12 = math.exp %11 : vector<64x128xf32>
    %cst_7 = arith.constant dense<0.000000e+00> : vector<64xf32>
    %13 = vector.multi_reduction <add>, %12, %cst_7 [1] : vector<64x128xf32> to vector<64xf32>
    %14 = vector.shape_cast %13 : vector<64xf32> to vector<64x1xf32>
    %15 = math.log %14 : vector<64x1xf32>
    %16 = arith.addf %15, %9 : vector<64x1xf32>
    %17 = vector.broadcast %16 : vector<64x1xf32> to vector<64x128xf32>
    %18 = arith.subf %7, %17 : vector<64x128xf32>
    %c0_8 = arith.constant 0 : index
    %c0_9 = arith.constant 0 : index
    %19 = vector.load %arg4[%c0_8, %c0_9] : memref<64x128xf32, #tpu.memory_space<vmem>>, vector<64x128xf32>
    tpu.vector_store %arg4[%c0_8, %c0_9], %18 {strides = array<i32>} : memref<64x128xf32, #tpu.memory_space<vmem>>, vector<64x128xf32>,
    return
  }
  func.func @transform_0(%arg0: i32) -> (i32, i32) {
    %c0_i32 = arith.constant 0 : i32
    %c0_i32_0 = arith.constant 0 : i32
    return %arg0, %c0_i32 : i32, i32
  }
  func.func @transform_1(%arg0: i32) -> (i32, i32) {
    %c0_i32 = arith.constant 0 : i32
    %c0_i32_0 = arith.constant 0 : i32
    %c0_i32_1 = arith.constant 0 : i32
    return %c0_i32, %c0_i32_0 : i32, i32
  }
  func.func @transform_2(%arg0: i32) -> (i32, i32) {
    %c0_i32 = arith.constant 0 : i32
    %c0_i32_0 = arith.constant 0 : i32
    %c0_i32_1 = arith.constant 0 : i32
    return %c0_i32, %c0_i32_0 : i32, i32
  }
  func.func @transform_3(%arg0: i32) -> (i32, i32) {
    %c0_i32 = arith.constant 0 : i32
    %c0_i32_0 = arith.constant 0 : i32
    return %arg0, %c0_i32 : i32, i32
  }
}

</mosaic_0001>

<bundles_post_ra>
// kernel: ngram_forward.1
= control target key start
LH: loop header
LB: loop body
LE: loop exit
PB: predicated region body
PF: predicated region fallthrough
CT: control target
= control target key end

     0   :  { %s455_s1 = inlined_call_operand.vmem [shape: f32[128,128], index: 1, kind: input, shape index: {}]   ;;  %s456_s2 = inlined_call_operand.vmem [shape: f32[1,128], index: 2, kind: input, shape index: {}]   ;;  %s457_s0 = inlined_call_operand.vmem [shape: f32[64,128], index: 0, kind: input, shape index: {}]   ;;  %s458_s3 = inlined_call_operand.vmem [shape: f32[64,128], index: 3, kind: output, shape index: {}]  }
   0x1   :  { %v45_v0 = vld [vmem:[%s455_s1 + $0x78] sm:$0xff]  ;;  %v44_v1 = vld [vmem:[%s455_s1 + $0x70] sm:$0xff]  ;;  %v43_v2 = vld [vmem:[%s455_s1 + $0x68] sm:$0xff] }
   0x2   :  { %50 = vmatpush.msra.mxu0 %v45_v0  ;;  %191 = vmatpush.msra.mxu1 %v45_v0  ;;  %v42_v3 = vld [vmem:[%s455_s1 + $0x60] sm:$0xff]  ;;  %v41_v4 = vld [vmem:[%s455_s1 + $0x58] sm:$0xff]  ;;  %v40_v5 = vld [vmem:[%s455_s1 + $0x50] sm:$0xff] }
   0x3   :  { %192 = vmatpush.msra.mxu2 %v45_v0  ;;  %193 = vmatpush.msra.mxu3 %v45_v0  ;;  %v39_v6 = vld [vmem:[%s455_s1 + $0x48] sm:$0xff]  ;;  %v38_v7 = vld [vmem:[%s455_s1 + $0x40] sm:$0xff]  ;;  %v37_v8 = vld [vmem:[%s455_s1 + $0x38] sm:$0xff] }
   0x4   :  { %51 = vmatpush.msra.mxu0 %v44_v1  ;;  %194 = vmatpush.msra.mxu1 %v44_v1  ;;  %v36_v9 = vld [vmem:[%s455_s1 + $0x30] sm:$0xff]  ;;  %v35_v10 = vld [vmem:[%s455_s1 + $0x28] sm:$0xff]  ;;  %v34_v11 = vld [vmem:[%s455_s1 + $0x20] sm:$0xff] }
   0x5   :  { %195 = vmatpush.msra.mxu2 %v44_v1  ;;  %196 = vmatpush.msra.mxu3 %v44_v1  ;;  %v33_v12 = vld [vmem:[%s455_s1 + $0x18] sm:$0xff]  ;;  %v32_v13 = vld [vmem:[%s455_s1 + $0x10] sm:$0xff]  ;;  %v14_v14 = vld [vmem:[%s457_s0] sm:$0xff] }
   0x6   :  { %52 = vmatpush.msra.mxu0 %v43_v2  ;;  %197 = vmatpush.msra.mxu1 %v43_v2  ;;  %v31_v15 = vld [vmem:[%s455_s1 + $0x8] sm:$0xff]  ;;  %v16_v16 = vld [vmem:[%s457_s0 + $0x10] sm:$0xff]  ;;  %v18_v17 = vld [vmem:[%s457_s0 + $0x20] sm:$0xff]  ;;  %v22_v19 = vmax.f32 %v14_v14, 0.0 }
   0x7   :  { %198 = vmatpush.msra.mxu2 %v43_v2  ;;  %199 = vmatpush.msra.mxu3 %v43_v2  ;;  %v30_v18 = vld [vmem:[%s455_s1] sm:$0xff]  ;;  %v20_v20 = vld [vmem:[%s457_s0 + $0x30] sm:$0xff]  ;;  %v24_v21 = vmax.f32 %v16_v16, 0.0  ;;  %v26_v22 = vmax.f32 %v18_v17, 0.0  ;;  %v15_v24 = vld [vmem:[%s457_s0 + $0x8] sm:$0xff] }
   0x8   :  { %53 = vmatpush.msra.mxu0 %v42_v3  ;;  %200 = vmatpush.msra.mxu1 %v42_v3  ;;  %v28_v23 = vmax.f32 %v20_v20, 0.0  ;;  %v17_v25 = vld [vmem:[%s457_s0 + $0x18] sm:$0xff]  ;;  %v19_v26 = vld [vmem:[%s457_s0 + $0x28] sm:$0xff]  ;;  %v23_v27 = vmax.f32 %v15_v24, 0.0  ;;  %v239_v32 = vld [vmem:[%s456_s2] ss:$0 sm:$0xff] }
   0x9   :  { %201 = vmatpush.msra.mxu2 %v42_v3  ;;  %202 = vmatpush.msra.mxu3 %v42_v3  ;;  %v21_v28 = vld [vmem:[%s457_s0 + $0x38] sm:$0xff]  ;;  %v25_v29 = vmax.f32 %v17_v25, 0.0  ;;  %v27_v30 = vmax.f32 %v19_v26, 0.0 }
   0xa   :  { %54 = vmatpush.msra.mxu0 %v41_v4  ;;  %203 = vmatpush.msra.mxu1 %v41_v4  ;;  %v29_v31 = vmax.f32 %v21_v28, 0.0 }
   0xb   :  { %204 = vmatpush.msra.mxu2 %v41_v4  ;;  %205 = vmatpush.msra.mxu3 %v41_v4 }
   0xc   :  { %55 = vmatpush.msra.mxu0 %v40_v5  ;;  %206 = vmatpush.msra.mxu1 %v40_v5 }
   0xd   :  { %207 = vmatpush.msra.mxu2 %v40_v5  ;;  %208 = vmatpush.msra.mxu3 %v40_v5 }
   0xe   :  { %56 = vmatpush.msra.mxu0 %v39_v6  ;;  %209 = vmatpush.msra.mxu1 %v39_v6 }
   0xf   :  { %210 = vmatpush.msra.mxu2 %v39_v6  ;;  %211 = vmatpush.msra.mxu3 %v39_v6 }
  0x10   :  { %57 = vmatpush.msra.mxu0 %v38_v7  ;;  %212 = vmatpush.msra.mxu1 %v38_v7 }
  0x11   :  { %213 = vmatpush.msra.mxu2 %v38_v7  ;;  %214 = vmatpush.msra.mxu3 %v38_v7 }
  0x12   :  { %58 = vmatpush.msra.mxu0 %v37_v8  ;;  %215 = vmatpush.msra.mxu1 %v37_v8 }
  0x13   :  { %216 = vmatpush.msra.mxu2 %v37_v8  ;;  %217 = vmatpush.msra.mxu3 %v37_v8 }
  0x14   :  { %59 = vmatpush.msra.mxu0 %v36_v9  ;;  %218 = vmatpush.msra.mxu1 %v36_v9 }
  0x15   :  { %219 = vmatpush.msra.mxu2 %v36_v9  ;;  %220 = vmatpush.msra.mxu3 %v36_v9 }
  0x16   :  { %60 = vmatpush.msra.mxu0 %v35_v10  ;;  %221 = vmatpush.msra.mxu1 %v35_v10 }
  0x17   :  { %222 = vmatpush.msra.mxu2 %v35_v10  ;;  %223 = vmatpush.msra.mxu3 %v35_v10 }
  0x18   :  { %61 = vmatpush.msra.mxu0 %v34_v11  ;;  %224 = vmatpush.msra.mxu1 %v34_v11 }
  0x19   :  { %225 = vmatpush.msra.mxu2 %v34_v11  ;;  %226 = vmatpush.msra.mxu3 %v34_v11 }
  0x1a   :  { %62 = vmatpush.msra.mxu0 %v33_v12  ;;  %227 = vmatpush.msra.mxu1 %v33_v12 }
  0x1b   :  { %228 = vmatpush.msra.mxu2 %v33_v12  ;;  %229 = vmatpush.msra.mxu3 %v33_v12 }
  0x1c   :  { %63 = vmatpush.msra.mxu0 %v32_v13  ;;  %230 = vmatpush.msra.mxu1 %v32_v13 }
  0x1d   :  { %231 = vmatpush.msra.mxu2 %v32_v13  ;;  %232 = vmatpush.msra.mxu3 %v32_v13 }
  0x1e   :  { %64 = vmatpush.msra.mxu0 %v31_v15  ;;  %233 = vmatpush.msra.mxu1 %v31_v15 }
  0x1f   :  { %234 = vmatpush.msra.mxu2 %v31_v15  ;;  %235 = vmatpush.msra.mxu3 %v31_v15 }
  0x20   :  { %65 = vmatpush.msra.mxu0 %v30_v18  ;;  %236 = vmatpush.msra.mxu1 %v30_v18 }
  0x21   :  { %237 = vmatpush.msra.mxu2 %v30_v18  ;;  %66 = vmatmul.f32.vlgmr.msra.gmra.mxu0 %v22_v19 }
  0x22   :  { %72 = vmatmul.f32.vlgmr.msra.gmra.mxu1 %v24_v21  ;;  %78 = vmatmul.f32.vlgmr.msra.gmra.mxu2 %v26_v22 }
  0x23   :  { %238 = vmatpush.msra.mxu3 %v30_v18 }
  0x24   :  { %84 = vmatmul.f32.vlgmr.msra.gmra.mxu3 %v28_v23 }
  0x29   :  { %69 = vmatmul.f32.gmra.mxu0 %v23_v27 }
  0x2a   :  { %75 = vmatmul.f32.gmra.mxu1 %v25_v29  ;;  %81 = vmatmul.f32.gmra.mxu2 %v27_v30 }
  0x2c   :  { %87 = vmatmul.f32.gmra.mxu3 %v29_v31 }
  0x9e   :  { %v67_v33 = vpop.f32.mrf.mxu0 }
  0x9f   :  { %v367_v34 = vadd.f32 %v239_v32, %v67_v33  ;;  %v73_v35 = vpop.f32.mrf.mxu1 }
  0xa0   :  { %v369_v36 = vadd.f32 %v239_v32, %v73_v35 }
  0xa1   :  { %91 = vmax.xlane.f32.xlu0 %v367_v34 }
  0xa2   :  { %95 = vmax.xlane.f32.xlu1 %v369_v36 }
  0xa5   :  { %v79_v37 = vpop.f32.mrf.mxu2 }
  0xa6   :  { %v373_v38 = vadd.f32 %v239_v32, %v79_v37  ;;  %v70_v39 = vpop.f32.mrf.mxu0 }
  0xa7   :  { %v375_v40 = vadd.f32 %v239_v32, %v70_v39  ;;  %v76_v41 = vpop.f32.mrf.mxu1  ;;  %v85_v42 = vpop.f32.mrf.mxu3 }
  0xa8   :  { %v377_v43 = vadd.f32 %v239_v32, %v76_v41  ;;  %99 = vmax.xlane.f32.xlu2 %v373_v38  ;;  %v384_v46 = vadd.f32 %v239_v32, %v85_v42 }
  0xa9   :  { %93 = vmax.xlane.f32.xlu0 %v375_v40 }
  0xaa   :  { %97 = vmax.xlane.f32.xlu1 %v377_v43 }
  0xad   :  { %v82_v44 = vpop.f32.mrf.mxu2 }
  0xae   :  { %v382_v45 = vadd.f32 %v239_v32, %v82_v44 }
  0xaf   :  { %v88_v47 = vpop.f32.mrf.mxu3 }
  0xb0   :  { %v386_v48 = vadd.f32 %v239_v32, %v88_v47  ;;  %101 = vmax.xlane.f32.xlu2 %v382_v45 }
  0xb1   :  { %103 = vmax.xlane.f32.xlu0 %v384_v46 }
  0xb2   :  { %105 = vmax.xlane.f32.xlu1 %v386_v48 }
 0x114   :  { %v92_v49 = vpop.xlane.xlu0 %91 }
 0x115   :  { %v96_v50 = vpop.xlane.xlu1 %95  ;;  %v107_v51 = vsub.f32 %v367_v34, %v92_v49 }
 0x116   :  { %v109_v52 = vsub.f32 %v369_v36, %v96_v50 }
 0x117   :  { %v115_v53 = vmul.f32 1.442695, %v107_v51 }
 0x118   :  { %v119_v54 = vmul.f32 1.442695, %v109_v52 }
 0x119   :  { %240 = vpow2.f32 %v115_v53 }
 0x11a   :  { %242 = vpow2.f32 %v119_v54 }
 0x11b   :  { %v393_v55 = vpop.xlane.xlu2 %99 }
 0x11c   :  { %v111_v56 = vsub.f32 %v373_v38, %v393_v55  ;;  %v397_v57 = vpop.xlane.xlu0 %93 }
 0x11d   :  { %v399_v58 = vpop.xlane.xlu1 %97  ;;  %v108_v62 = vsub.f32 %v375_v40, %v397_v57 }
 0x11e   :  { %v123_v59 = vmul.f32 1.442695, %v111_v56  ;;  %v110_v60 = vsub.f32 %v377_v43, %v399_v58 }
 0x11f   :  { %v241_v61 = vpop.eup %240  ;;  %v117_v1 = vmul.f32 1.442695, %v108_v62 }
 0x120   :  { %v243_v63 = vpop.eup %242  ;;  %244 = vpow2.f32 %v123_v59  ;;  %v121_v0 = vmul.f32 1.442695, %v110_v60  ;;  %131 = vadd.xlane.f32.xlu2 %v241_v61 }
 0x121   :  { %135 = vadd.xlane.f32.xlu1 %v243_v63 }
 0x122   :  { %246 = vpow2.f32 %v121_v0 }
 0x123   :  { %v405_v2 = vpop.xlane.xlu2 %101  ;;  %248 = vpow2.f32 %v117_v1 }
 0x124   :  { %v112_v3 = vsub.f32 %v382_v45, %v405_v2  ;;  %v409_v4 = vpop.xlane.xlu0 %103 }
 0x125   :  { %v411_v5 = vpop.xlane.xlu1 %105  ;;  %v113_v6 = vsub.f32 %v384_v46, %v409_v4 }
 0x126   :  { %v245_v7 = vpop.eup %244  ;;  %v125_v8 = vmul.f32 1.442695, %v112_v3  ;;  %v114_v11 = vsub.f32 %v386_v48, %v411_v5 }
 0x127   :  { %v127_v9 = vmul.f32 1.442695, %v113_v6  ;;  %139 = vadd.xlane.f32.xlu0 %v245_v7 }
 0x128   :  { %v247_v10 = vpop.eup %246  ;;  %250 = vpow2.f32 %v125_v8  ;;  %v129_v12 = vmul.f32 1.442695, %v114_v11 }
 0x129   :  { %252 = vpow2.f32 %v127_v9  ;;  %137 = vadd.xlane.f32.xlu2 %v247_v10  ;;  %v249_v13 = vpop.eup %248 }
 0x12a   :  { %254 = vpow2.f32 %v129_v12 }
 0x12e   :  { %v251_v14 = vpop.eup %250 }
 0x12f   :  { %v253_v15 = vpop.eup %252  ;;  %141 = vadd.xlane.f32.xlu1 %v251_v14  ;;  %133 = vadd.xlane.f32.xlu0 %v249_v13 }
 0x130   :  { %v255_v16 = vpop.eup %254 }
 0x131   :  { %143 = vadd.xlane.f32.xlu2 %v253_v15 }
 0x137   :  { %145 = vadd.xlane.f32.xlu0 %v255_v16 }
 0x193   :  { %v132_v17 = vpop.xlane.xlu2 %131 }
 0x194   :  { %v136_v18 = vpop.xlane.xlu1 %135  ;;  %256 = vlog2.f32 %v132_v17 }
 0x195   :  { %258 = vlog2.f32 %v136_v18 }
 0x19a   :  { %v257_v19 = vpop.eup %256  ;;  %v140_v20 = vpop.xlane.xlu0 %139 }
 0x19b   :  { %v259_v21 = vpop.eup %258  ;;  %v148_v22 = vmul.f32 0.6931472, %v257_v19  ;;  %260 = vlog2.f32 %v140_v20 }
 0x19c   :  { %v152_v23 = vmul.f32 0.6931472, %v259_v21  ;;  %v138_v24 = vpop.xlane.xlu2 %137 }
 0x19d   :  { %v163_v25 = vadd.f32 %v148_v22, %v92_v49  ;;  %262 = vlog2.f32 %v138_v24 }
 0x19e   :  { %v165_v26 = vadd.f32 %v152_v23, %v96_v50 }
 0x19f   :  { %v171_v27 = vsub.f32 %v367_v34, %v163_v25 }
 0x1a0   :  { %v173_v28 = vsub.f32 %v369_v36, %v165_v26 }
 0x1a1   :  { %v261_v29 = vpop.eup %260  ;;  %179 = vst [vmem:[%s458_s3] sm:$0xff] %v171_v27 }
 0x1a2   :  { %181 = vst [vmem:[%s458_s3 + $0x10] sm:$0xff] %v173_v28  ;;  %v156_v30 = vmul.f32 0.6931472, %v261_v29  ;;  %v142_v31 = vpop.xlane.xlu1 %141  ;;  %v134_v32 = vpop.xlane.xlu0 %133 }
 0x1a3   :  { %v263_v33 = vpop.eup %262  ;;  %264 = vlog2.f32 %v142_v31 }
 0x1a4   :  { %v167_v35 = vadd.f32 %v156_v30, %v393_v55  ;;  %v154_v37 = vmul.f32 0.6931472, %v263_v33  ;;  %266 = vlog2.f32 %v134_v32  ;;  %v144_v34 = vpop.xlane.xlu2 %143 }
 0x1a5   :  { %268 = vlog2.f32 %v144_v34 }
 0x1a6   :  { %v175_v36 = vsub.f32 %v373_v38, %v167_v35  ;;  %v166_v39 = vadd.f32 %v154_v37, %v399_v58 }
 0x1a8   :  { %183 = vst [vmem:[%s458_s3 + $0x20] sm:$0xff] %v175_v36  ;;  %v174_v41 = vsub.f32 %v377_v43, %v166_v39 }
 0x1a9   :  { %v265_v42 = vpop.eup %264 }
 0x1aa   :  { %v267_v44 = vpop.eup %266  ;;  %182 = vst [vmem:[%s458_s3 + $0x18] sm:$0xff] %v174_v41  ;;  %v158_v47 = vmul.f32 0.6931472, %v265_v42  ;;  %v146_v49 = vpop.xlane.xlu0 %145 }
 0x1ab   :  { %v269_v50 = vpop.eup %268  ;;  %v150_v51 = vmul.f32 0.6931472, %v267_v44  ;;  %270 = vlog2.f32 %v146_v49 }
 0x1ac   :  { %v168_v38 = vadd.f32 %v158_v47, %v405_v2  ;;  %v160_v52 = vmul.f32 0.6931472, %v269_v50 }
 0x1ad   :  { %v164_v53 = vadd.f32 %v150_v51, %v397_v57 }
 0x1ae   :  { %v176_v54 = vsub.f32 %v382_v45, %v168_v38  ;;  %v169_v43 = vadd.f32 %v160_v52, %v409_v4 }
 0x1af   :  { %v172_v55 = vsub.f32 %v375_v40, %v164_v53 }
 0x1b0   :  { %184 = vst [vmem:[%s458_s3 + $0x28] sm:$0xff] %v176_v54  ;;  %v177_v56 = vsub.f32 %v384_v46, %v169_v43 }
 0x1b1   :  { %v271_v58 = vpop.eup %270  ;;  %180 = vst [vmem:[%s458_s3 + $0x8] sm:$0xff] %v172_v55 }
 0x1b2   :  { %185 = vst [vmem:[%s458_s3 + $0x30] sm:$0xff] %v177_v56  ;;  %v162_v45 = vmul.f32 0.6931472, %v271_v58 }
 0x1b4   :  { %v170_v57 = vadd.f32 %v162_v45, %v411_v5 }
 0x1b6   :  { %v178_v40 = vsub.f32 %v386_v48, %v170_v57 }
 0x1b8   :  { %186 = vst [vmem:[%s458_s3 + $0x38] sm:$0xff] %v178_v40 }

</bundles_post_ra>
